<compile_context>
chip_gen: v5e
topology: v5e:2x2
jax: 0.10.0
libtpu: 0.0.40
codegen_flags: <defaults>
</compile_context>

<pallas_src>
import functools

import jax
import jax.numpy as jnp
from jax.experimental import pallas as pl
from jax.experimental.pallas import tpu as pltpu

_MIB = 1024 * 1024


def _round_up(x, m):
    return (x + m - 1) // m * m


def _bias_gelu_tanh(x):
    # Megatron bias_gelu_impl: x * 0.5 * (1 + tanh(0.79788456*x*(1 + 0.044715*x^2)))
    return x * 0.5 * (1.0 + jnp.tanh(0.7978845608028654 * x * (1.0 + 0.044715 * x * x)))


# ----------------------------------------------------------------------------
# Kernels.  Weight refs arrive pre-transposed to [in, out] layout so both
# matmuls are canonical ((1,),(0,)) contractions (no per-step weight transposes).
# ----------------------------------------------------------------------------
def _mlp_resident_kernel(x_ref, w1_ref, b1_ref, w2_ref, o_ref):
    # x_ref: (tm, H)  w1_ref: (H, F)  b1_ref: (1, F)  w2_ref: (F, H)  o_ref: (tm, H)
    h = jnp.dot(x_ref[...], w1_ref[...], preferred_element_type=jnp.float32)
    h = _bias_gelu_tanh(h + b1_ref[...])                       # fused bias + gelu, f32
    o_ref[...] = jnp.dot(h.astype(w2_ref.dtype), w2_ref[...],
                         preferred_element_type=jnp.float32).astype(o_ref.dtype)


def _mlp_streamed_kernel(x_ref, w1_ref, b1_ref, w2_ref, o_ref, acc_ref):
    # x_ref: (tm, H)  w1_ref: (H, tf)  b1_ref: (1, tf)  w2_ref: (tf, H)
    # o_ref: (tm, H)  acc_ref: (tm, H) f32 scratch
    f = pl.program_id(1)

    h = jnp.dot(x_ref[...], w1_ref[...], preferred_element_type=jnp.float32)
    h = _bias_gelu_tanh(h + b1_ref[...])                       # fused bias + gelu, f32
    contrib = jnp.dot(h.astype(w2_ref.dtype), w2_ref[...],
                      preferred_element_type=jnp.float32)

    # First chunk assigns (skips the zero-fill + accumulator read), rest add.
    @pl.when(f == 0)
    def _():
        acc_ref[...] = contrib

    @pl.when(f > 0)
    def _():
        acc_ref[...] += contrib

    @pl.when(f == pl.num_programs(1) - 1)
    def _():
        o_ref[...] = acc_ref[...].astype(o_ref.dtype)


# ----------------------------------------------------------------------------
# Tiling / VMEM planning helpers.
# ----------------------------------------------------------------------------
def _tpu_vmem_capacity():
    try:
        return int(pltpu.get_tpu_info().vmem_capacity_bytes)
    except Exception:
        return 128 * _MIB


def _tpu_kind():
    try:
        return jax.devices()[0].device_kind.lower()
    except Exception:
        return ""


def _pick_tf(F, target):
    """Largest multiple of 128 that divides F and is <= target (fallback: F)."""
    target = min(target, F)
    cand = (target // 128) * 128
    while cand >= 128:
        if F % cand == 0:
            return cand
        cand -= 128
    return F


def _vmem_bytes(tm, tf, H, F, in_isz, out_isz, resident):
    """Exact working set: 2 buffers per auto-pipelined in/out spec + scratch once."""
    if resident:
        return (2 * tm * H * in_isz + 2 * tm * H * out_isz          # x, out tiles
                + 2 * H * F * in_isz + 2 * F * H * in_isz           # W1, W2 resident
                + 2 * F * 4)                                        # b1 (f32)
    return (2 * tm * H * in_isz + 2 * tm * H * out_isz              # x, out tiles
            + 2 * H * tf * in_isz + 2 * tf * H * in_isz             # W1, W2 chunks
            + 2 * tf * 4                                            # b1 chunk (f32)
            + tm * H * 4)                                           # f32 accumulator


def _tile_plan(M, H, F, in_isz, out_isz, kind, vmem_cap):
    """Generation / dtype aware (tm, tf, resident) choice under a VMEM budget."""
    sub = 16 if in_isz == 2 else 8
    if "v6" in kind:
        tm_t, tf_t = 1024, 256
    elif "v7" in kind:
        tm_t, tf_t = 640, 256
    elif "v5" in kind:
        tm_t, tf_t = 512, 512
    else:
        tm_t, tf_t = 512, 256
    if in_isz == 4:              # f32: intensity vs weight bytes is tm/2 -> more rows
        tm_t *= 2

    tm = max(sub, min(_round_up(tm_t, sub), _round_up(M, sub)))
    # 2-TensorCore parts (v7x): keep >= 2 row tiles so both cores get work.
    if "v7" in kind and M >= 2 * sub:
        tm = max(sub, min(tm, _round_up((M + 1) // 2, sub)))

    budget = max(vmem_cap - 16 * _MIB, 8 * _MIB)

    # Weights-resident fast path: W1 + W2 live in VMEM, read from HBM once.
    weight_resident = 2 * (H * F + F * H) * in_isz + 2 * F * 4
    if weight_resident <= (budget * 3) // 4:
        tm_r = tm
        while _vmem_bytes(tm_r, F, H, F, in_isz, out_isz, True) > budget and tm_r > sub:
            new_tm = max(sub, _round_up(tm_r // 2, sub))
            if new_tm >= tm_r:
                break
            tm_r = new_tm
        if _vmem_bytes(tm_r, F, H, F, in_isz, out_isz, True) <= budget:
            return tm_r, F, True

    # Streamed path: chunk F, fit working set by shrinking tm first, then tf.
    tf = _pick_tf(F, tf_t)
    while _vmem_bytes(tm, tf, H, F, in_isz, out_isz, False) > budget and tm > sub:
        new_tm = max(sub, _round_up(tm // 2, sub))
        if new_tm >= tm:
            break
        tm = new_tm
    while _vmem_bytes(tm, tf, H, F, in_isz, out_isz, False) > budget and tf > 128:
        new_tf = _pick_tf(F, tf // 2)
        if new_tf >= tf:
            break
        tf = new_tf
    return tm, tf, False


# ----------------------------------------------------------------------------
# pallas_call wrapper.
# ----------------------------------------------------------------------------
@functools.partial(
    jax.jit, static_argnames=("tm", "tf", "resident", "out_dtype", "vmem_limit"))
def _mlp_call(x, w1t, b1, w2t, *, tm, tf, resident, out_dtype, vmem_limit):
    M, H = x.shape
    F = w1t.shape[1]
    out_dtype = jnp.dtype(out_dtype)
    M_pad = _round_up(M, tm)
    if M_pad != M:
        x = jnp.pad(x, ((0, M_pad - M), (0, 0)))
    n_i = M_pad // tm

    w_isz = w1t.dtype.itemsize
    cost = pl.CostEstimate(
        flops=4 * M_pad * H * F,
        transcendentals=M_pad * F,
        bytes_accessed=(M_pad * H * x.dtype.itemsize             # x
                        + M_pad * H * out_dtype.itemsize         # out
                        + (1 if resident else n_i) * 2 * F * H * w_isz  # weights
                        + F * 4),                                # bias
    )

    if resident:
        out = pl.pallas_call(
            _mlp_resident_kernel,
            out_shape=jax.ShapeDtypeStruct((M_pad, H), out_dtype),
            grid_spec=pltpu.PrefetchScalarGridSpec(
                num_scalar_prefetch=0,
                grid=(n_i,),
                in_specs=[
                    pl.BlockSpec((tm, H), lambda i: (i, 0)),      # x row tile
                    pl.BlockSpec((H, F), lambda i: (0, 0)),       # W1^T resident
                    pl.BlockSpec((1, F), lambda i: (0, 0)),       # b1 (f32)
                    pl.BlockSpec((F, H), lambda i: (0, 0)),       # W2^T resident
                ],
                out_specs=pl.BlockSpec((tm, H), lambda i: (i, 0)),
            ),
            compiler_params=pltpu.CompilerParams(
                dimension_semantics=("parallel",),
                vmem_limit_bytes=vmem_limit),
            cost_estimate=cost,
        )(x, w1t, b1, w2t)
    else:
        out = pl.pallas_call(
            _mlp_streamed_kernel,
            out_shape=jax.ShapeDtypeStruct((M_pad, H), out_dtype),
            grid_spec=pltpu.PrefetchScalarGridSpec(
                num_scalar_prefetch=0,
                grid=(n_i, F // tf),
                in_specs=[
                    pl.BlockSpec((tm, H), lambda i, f: (i, 0)),   # x tile (resident over f)
                    pl.BlockSpec((H, tf), lambda i, f: (0, f)),   # W1^T chunk
                    pl.BlockSpec((1, tf), lambda i, f: (0, f)),   # b1 chunk (f32)
                    pl.BlockSpec((tf, H), lambda i, f: (f, 0)),   # W2^T chunk
                ],
                out_specs=pl.BlockSpec((tm, H), lambda i, f: (i, 0)),
                scratch_shapes=[pltpu.VMEM((tm, H), jnp.float32)],
            ),
            compiler_params=pltpu.CompilerParams(
                dimension_semantics=("parallel", "arbitrary"),
                vmem_limit_bytes=vmem_limit),
            cost_estimate=cost,
        )(x, w1t, b1, w2t)

    return out[:M] if M_pad != M else out


def transformer_mlp(hidden_states, w1, b1, w2, b2, *, compute_dtype=jnp.bfloat16,
                    tm=None, tf=None):
    """hidden_states: [S, B, H]; w1: [4H, H]; b1: [4H]; w2: [H, 4H]; b2: [H].

    Returns (output [S, B, H], output_bias [H]); output_bias is NOT added
    (skip_bias_add semantics).  compute_dtype=jnp.bfloat16 is the default
    (native MXU rate, half the streamed-weight HBM traffic); pass
    compute_dtype=None to run the matmuls in the input dtype (parity path).
    Output is always returned in the input dtype.
    """
    S, B, H = hidden_states.shape
    F = w1.shape[0]
    out_dtype = hidden_states.dtype
    x = hidden_states.reshape(S * B, H)
    if compute_dtype is not None:
        x = x.astype(compute_dtype)
        w1 = w1.astype(compute_dtype)
        w2 = w2.astype(compute_dtype)
    # One-time transpose to [in, out] layout (outside the kernel) so both
    # in-kernel matmuls contract ((1,),(0,)) with no per-chunk XLU transposes.
    # In a real model, store the weights pre-transposed.
    w1t = jnp.transpose(w1)                         # (H, F)
    w2t = jnp.transpose(w2)                         # (F, H)
    b1 = b1.astype(jnp.float32).reshape(1, F)       # bias + gelu run in f32

    M = x.shape[0]
    in_isz = x.dtype.itemsize
    out_isz = jnp.dtype(out_dtype).itemsize
    kind = _tpu_kind()
    vmem_cap = _tpu_vmem_capacity()

    tm_p, tf_p, resident = _tile_plan(M, H, F, in_isz, out_isz, kind, vmem_cap)
    sub = 16 if in_isz == 2 else 8
    if tm is not None:                              # manual override
        tm_p = max(sub, min(_round_up(tm, sub), _round_up(M, sub)))
    if tf is not None and not resident:
        tf_p = _pick_tf(F, tf)

    vmem_est = _vmem_bytes(tm_p, tf_p, H, F, in_isz, out_isz, resident)
    vmem_limit = int(min(max(vmem_est + max(vmem_est // 4, 4 * _MIB), 16 * _MIB),
                         vmem_cap - 8 * _MIB))

    out = _mlp_call(x, w1t, b1, w2t, tm=tm_p, tf=tf_p, resident=resident,
                    out_dtype=jnp.dtype(out_dtype).name, vmem_limit=vmem_limit)
    # TODO(synk): dropout is mentioned in the module docstring but the reference
    # forward applies none, so none is applied here either.
    return out.reshape(S, B, H), b2


def _reference(hidden_states, w1, b1, w2, b2):
    inter = jnp.einsum("sbh,fh->sbf", hidden_states, w1)        # skip_bias_add
    inter = _bias_gelu_tanh(inter + b1)                         # fused bias + gelu
    out = jnp.einsum("sbf,hf->sbh", inter, w2)                  # skip_bias_add
    return out, b2


if __name__ == "__main__":
    hidden_size = 128
    mlp_ratio = 4
    ffn_size = int(hidden_size * mlp_ratio)
    seq, batch = 8, 2

    key = jax.random.PRNGKey(0)
    k_x, k_w1, k_b1, k_w2, k_b2 = jax.random.split(key, 5)

    x = jax.random.normal(k_x, (seq, batch, hidden_size), dtype=jnp.float32)
    # PyTorch Linear weight layout: [out_features, in_features]
    w1 = jax.random.normal(k_w1, (ffn_size, hidden_size), dtype=jnp.float32) * 0.02
    b1 = jax.random.normal(k_b1, (ffn_size,), dtype=jnp.float32) * 0.02
    w2 = jax.random.normal(k_w2, (hidden_size, ffn_size), dtype=jnp.float32) * 0.02
    b2 = jax.random.normal(k_b2, (hidden_size,), dtype=jnp.float32) * 0.02

    ref_out, ref_bias = _reference(x, w1, b1, w2, b2)

    # Production default: bf16 MXU path (loose tolerance vs f32 reference).
    out_bf16, out_bias = transformer_mlp(x, w1, b1, w2, b2)
    out_bf16 = jax.block_until_ready(out_bf16)
    out_bias = jax.block_until_ready(out_bias)
    assert out_bf16.shape == (seq, batch, hidden_size)
    assert out_bf16.dtype == x.dtype
    assert out_bias.shape == (hidden_size,)
    assert jnp.allclose(out_bf16, ref_out, atol=5e-2, rtol=5e-2)
    assert jnp.allclose(out_bias, ref_bias)

    # Parity path: f32 compute, tight tolerance vs the reference.
    out_f32, _ = transformer_mlp(x, w1, b1, w2, b2, compute_dtype=None)
    out_f32 = jax.block_until_ready(out_f32)
    assert jnp.allclose(out_f32, ref_out, atol=1e-4, rtol=1e-4)

    print("KERNEL_OK")
</pallas_src>

<mosaic_0001>
module attributes {stable_mosaic.version = 11 : i64} {
  func.func @_mlp_resident_kernel(%arg0: i32, %arg1: memref<16x128xbf16, #tpu.memory_space<vmem>>, %arg2: memref<128x512xbf16, #tpu.memory_space<vmem>>, %arg3: memref<1x512xf32, #tpu.memory_space<vmem>>, %arg4: memref<512x128xbf16, #tpu.memory_space<vmem>>, %arg5: memref<16x128xf32, #tpu.memory_space<vmem>>) attributes {dimension_semantics = [#tpu.dimension_semantics<parallel>], iteration_bounds = array<i64: 1>, scalar_prefetch = 0 : i64, scratch_operands = 0 : i64, tpu.core_type = #tpu.core_type<tc>, window_params = [{transform_indices = @transform_0, window_bounds = array<i64: 16, 128>}, {pipeline_mode = #tpu.pipeline_mode<synchronous>, transform_indices = @transform_1, window_bounds = array<i64: 128, 512>}, {pipeline_mode = #tpu.pipeline_mode<synchronous>, transform_indices = @transform_2, window_bounds = array<i64: 1, 512>}, {pipeline_mode = #tpu.pipeline_mode<synchronous>, transform_indices = @transform_3, window_bounds = array<i64: 512, 128>}, {transform_indices = @transform_4, window_bounds = array<i64: 16, 128>}]} {
    %c0 = arith.constant 0 : index
    %c0_0 = arith.constant 0 : index
    %0 = vector.load %arg1[%c0, %c0_0] : memref<16x128xbf16, #tpu.memory_space<vmem>>, vector<16x128xbf16>
    %c0_1 = arith.constant 0 : index
    %c0_2 = arith.constant 0 : index
    %1 = vector.load %arg2[%c0_1, %c0_2] : memref<128x512xbf16, #tpu.memory_space<vmem>>, vector<128x512xbf16>
    %cst = arith.constant dense<0.000000e+00> : vector<16x512xf32>
    %2 = tpu.matmul %0, %1, %cst {dimension_numbers = #tpu.dot_dimension_numbers<[1], [0], [0], [1], [0, 0, 1, 1], [], []>} : vector<16x128xbf16>, vector<128x512xbf16>, vector<16x512xf32> -> vector<16x512xf32>
    %c0_3 = arith.constant 0 : index
    %c0_4 = arith.constant 0 : index
    %3 = vector.load %arg3[%c0_3, %c0_4] : memref<1x512xf32, #tpu.memory_space<vmem>>, vector<1x512xf32>
    %4 = vector.broadcast %3 : vector<1x512xf32> to vector<16x512xf32>
    %5 = arith.addf %2, %4 : vector<16x512xf32>
    %cst_5 = arith.constant 5.000000e-01 : f32
    %6 = vector.broadcast %cst_5 : f32 to vector<16x512xf32>
    %7 = arith.mulf %5, %6 : vector<16x512xf32>
    %cst_6 = arith.constant 0.797884583 : f32
    %8 = vector.broadcast %cst_6 : f32 to vector<16x512xf32>
    %9 = arith.mulf %8, %5 : vector<16x512xf32>
    %cst_7 = arith.constant 4.471500e-02 : f32
    %10 = vector.broadcast %cst_7 : f32 to vector<16x512xf32>
    %11 = arith.mulf %10, %5 : vector<16x512xf32>
    %12 = arith.mulf %11, %5 : vector<16x512xf32>
    %cst_8 = arith.constant 1.000000e+00 : f32
    %13 = vector.broadcast %cst_8 : f32 to vector<16x512xf32>
    %14 = arith.addf %13, %12 : vector<16x512xf32>
    %15 = arith.mulf %9, %14 : vector<16x512xf32>
    %16 = math.tanh %15 : vector<16x512xf32>
    %cst_9 = arith.constant 1.000000e+00 : f32
    %17 = vector.broadcast %cst_9 : f32 to vector<16x512xf32>
    %18 = arith.addf %17, %16 : vector<16x512xf32>
    %19 = arith.mulf %7, %18 : vector<16x512xf32>
    %20 = arith.truncf %19 : vector<16x512xf32> to vector<16x512xbf16>
    %c0_10 = arith.constant 0 : index
    %c0_11 = arith.constant 0 : index
    %21 = vector.load %arg4[%c0_10, %c0_11] : memref<512x128xbf16, #tpu.memory_space<vmem>>, vector<512x128xbf16>
    %cst_12 = arith.constant dense<0.000000e+00> : vector<16x128xf32>
    %22 = tpu.matmul %20, %21, %cst_12 {dimension_numbers = #tpu.dot_dimension_numbers<[1], [0], [0], [1], [0, 0, 1, 1], [], []>} : vector<16x512xbf16>, vector<512x128xbf16>, vector<16x128xf32> -> vector<16x128xf32>
    %c0_13 = arith.constant 0 : index
    %c0_14 = arith.constant 0 : index
    %23 = vector.load %arg5[%c0_13, %c0_14] : memref<16x128xf32, #tpu.memory_space<vmem>>, vector<16x128xf32>
    tpu.vector_store %arg5[%c0_13, %c0_14], %22 {strides = array<i32>} : memref<16x128xf32, #tpu.memory_space<vmem>>, vector<16x128xf32>,
    return
  }
  func.func @transform_0(%arg0: i32) -> (i32, i32) {
    %c0_i32 = arith.constant 0 : i32
    %c0_i32_0 = arith.constant 0 : i32
    return %arg0, %c0_i32 : i32, i32
  }
  func.func @transform_1(%arg0: i32) -> (i32, i32) {
    %c0_i32 = arith.constant 0 : i32
    %c0_i32_0 = arith.constant 0 : i32
    %c0_i32_1 = arith.constant 0 : i32
    return %c0_i32, %c0_i32_0 : i32, i32
  }
  func.func @transform_2(%arg0: i32) -> (i32, i32) {
    %c0_i32 = arith.constant 0 : i32
    %c0_i32_0 = arith.constant 0 : i32
    %c0_i32_1 = arith.constant 0 : i32
    return %c0_i32, %c0_i32_0 : i32, i32
  }
  func.func @transform_3(%arg0: i32) -> (i32, i32) {
    %c0_i32 = arith.constant 0 : i32
    %c0_i32_0 = arith.constant 0 : i32
    %c0_i32_1 = arith.constant 0 : i32
    return %c0_i32, %c0_i32_0 : i32, i32
  }
  func.func @transform_4(%arg0: i32) -> (i32, i32) {
    %c0_i32 = arith.constant 0 : i32
    %c0_i32_0 = arith.constant 0 : i32
    return %arg0, %c0_i32 : i32, i32
  }
}

</mosaic_0001>

<bundles_post_ra>
// kernel: _mlp_call.1
= control target key start
LH: loop header
LB: loop body
LE: loop exit
PB: predicated region body
PF: predicated region fallthrough
CT: control target
= control target key end

     0   :  { %9 = vsyncpa [#allocation3], 0  ;;  %s1317_s0 = inlined_call_operand.hbm [shape: bf16[16,128], index: 0, kind: input, shape index: {}]   ;;  %s1318_s1 = inlined_call_operand.hbm [shape: bf16[128,512], index: 1, kind: input, shape index: {}]   ;;  %s1319_s2 = inlined_call_operand.hbm [shape: f32[1,512], index: 2, kind: input, shape index: {}]   ;;  %s1320_s3 = inlined_call_operand.hbm [shape: bf16[512,128], index: 3, kind: input, shape index: {}]   ;;  %s1321_s4 = inlined_call_operand.hbm [shape: f32[16,128], index: 4, kind: output, shape index: {}]  }
   0x1   :  { %10 = vsyncpa [#allocation6], 0 }
   0x2   :  { %11 = vsyncpa [#allocation9], 0  ;;  %s30_s17 = sshll.u32 %s1318_s1, 4  ;;  %s31_s17 = int_to_ptr.hbm [resolvable:$true] %s30_s17 }
   0x3   :  { %12 = vsyncpa [#allocation4], 0  ;;  %s1236_s18 = smov [#allocation5]   ;;  %s17_s22 = sshll.u32 %s1317_s0, 4  ;;  %s18_s22 = int_to_ptr.hbm [resolvable:$true] %s17_s22 }
   0x4   :  { %s32_s19 = sshll.u32 %s1236_s18, 4  ;;  %s1237_s23 = smov 256   ;;  %s33_s19 = int_to_ptr.vmem [resolvable:$true] %s32_s19 }
   0x5   :  { %s1238_s24 = smov 16   ;;  %s1239_s25 = smov [#allocation2]  }
   0x6   :  { %38 = dma.hbm_to_vmem [thread:$0]  %s31_s17, 4096, %s33_s19, [#allocation6], %s1237_s23, %s1237_s23, %s1238_s24  }
   0x7   :  { %s19_s26 = sshll.u32 %s1239_s25, 4  ;;  %s1240_s27 = smov 64   ;;  %s20_s26 = int_to_ptr.vmem [resolvable:$true] %s19_s26 }
   0x8   :  { %s1241_s28 = smov 4   ;;  %s44_s30 = sshll.u32 %s1319_s2, 4  ;;  %s45_s30 = int_to_ptr.hbm [resolvable:$true] %s44_s30 }
   0x9   :  { %25 = dma.hbm_to_vmem [thread:$0]  %s18_s22, 128, %s20_s26, [#allocation3], %s1240_s27, %s1240_s27, %s1241_s28  }
   0xa   :  { %s1242_s5 = smov [#allocation7]   ;;  %s54_s8 = sshll.u32 %s1320_s3, 4  ;;  %s55_s8 = int_to_ptr.hbm [resolvable:$true] %s54_s8 }
   0xb   :  { %s46_s6 = sshll.u32 %s1242_s5, 4  ;;  %s1243_s9 = smov [#allocation8]   ;;  %s47_s6 = int_to_ptr.vmem [resolvable:$true] %s46_s6 }
   0xc   :  { %49 = dma.hbm_to_vmem [thread:$0]  %s45_s30, 64, %s47_s6, [#allocation6]  }
   0xd   :  { %s56_s10 = sshll.u32 %s1243_s9, 4  ;;  %s57_s10 = int_to_ptr.vmem [resolvable:$true] %s56_s10 }
   0xe   :  { %62 = dma.hbm_to_vmem [thread:$0]  %s55_s8, 4096, %s57_s10, [#allocation9], %s1240_s27, %s1240_s27, %s1241_s28  }
   0xf   :  { %1228 = dma.done.wait [#allocation3], 128  }
  0x10   :  { %1229 = vsyncadd [#allocation3], 4294967168 }
  0x11   :  { %1230 = dma.done.wait [#allocation6], 4160  }
  0x12   :  { %1231 = vsyncadd [#allocation6], 4294963136 }
  0x13   :  { %1232 = dma.done.wait [#allocation9], 4096  }
  0x14   :  { %1233 = vsyncadd [#allocation9], 4294963200  ;;  %v874_v0 = vld [vmem:[#allocation5 + $0xe0] sm:$0xf]  ;;  %v1047_v1 = vld [vmem:[#allocation5 + $0xec] sm:$0xf0] }
  0x15   :  { %v1045_v2 = vld [vmem:[#allocation5 + $0xe4] sm:$0xf]  ;;  %v875_v3 = vor.u32 %v1047_v1, %v874_v0  ;;  %v876_v4 = vld [vmem:[#allocation5 + $0xf0] sm:$0xf0]  ;;  %v882_v5 = vld [vmem:[#allocation5 + $0xe8] sm:$0xf] }
  0x16   :  { %v1048_v6 = vld [vmem:[#allocation5 + $0xf4] sm:$0xf0]  ;;  %v879_v7 = vor.u32 %v1045_v2, %v876_v4  ;;  %v1046_v9 = vld [vmem:[#allocation5 + $0xec] sm:$0xf]  ;;  %v884_v10 = vld [vmem:[#allocation5 + $0xf8] sm:$0xf0] }
  0x17   :  { %v883_v8 = vor.u32 %v1048_v6, %v882_v5  ;;  %v858_v11 = vld [vmem:[#allocation5 + $0xc0] sm:$0xf]  ;;  %289 = vmatpush.bf16.msra.mxu0 %v875_v3  ;;  %v887_v12 = vor.u32 %v1046_v9, %v884_v10  ;;  %v1043_v13 = vld [vmem:[#allocation5 + $0xcc] sm:$0xf0]  ;;  %v1041_v14 = vld [vmem:[#allocation5 + $0xc4] sm:$0xf] }
  0x18   :  { %v860_v15 = vld [vmem:[#allocation5 + $0xd0] sm:$0xf0]  ;;  %303 = vmatpush.bf16.msra.mxu1 %v879_v7  ;;  %v859_v16 = vor.u32 %v1043_v13, %v858_v11  ;;  %v866_v18 = vld [vmem:[#allocation5 + $0xc8] sm:$0xf]  ;;  %v1044_v19 = vld [vmem:[#allocation5 + $0xd4] sm:$0xf0] }
  0x19   :  { %317 = vmatpush.bf16.msra.mxu2 %v883_v8  ;;  %v863_v17 = vor.u32 %v1041_v14, %v860_v15  ;;  %v1042_v20 = vld [vmem:[#allocation5 + $0xcc] sm:$0xf]  ;;  %331 = vmatpush.bf16.msra.mxu3 %v887_v12  ;;  %v867_v21 = vor.u32 %v1044_v19, %v866_v18  ;;  %v868_v22 = vld [vmem:[#allocation5 + $0xd8] sm:$0xf0]  ;;  %v842_v23 = vld [vmem:[#allocation5 + $0xa0] sm:$0xf] }
  0x1a   :  { %v1039_v24 = vld [vmem:[#allocation5 + $0xac] sm:$0xf0]  ;;  %v871_v25 = vor.u32 %v1042_v20, %v868_v22  ;;  %v1037_v26 = vld [vmem:[#allocation5 + $0xa4] sm:$0xf]  ;;  %v844_v27 = vld [vmem:[#allocation5 + $0xb0] sm:$0xf0] }
  0x1b   :  { %v850_v28 = vld [vmem:[#allocation5 + $0xa8] sm:$0xf]  ;;  %290 = vmatpush.bf16.msra.mxu0 %v859_v16  ;;  %v843_v29 = vor.u32 %v1039_v24, %v842_v23  ;;  %v1040_v30 = vld [vmem:[#allocation5 + $0xb4] sm:$0xf0]  ;;  %v1038_v31 = vld [vmem:[#allocation5 + $0xac] sm:$0xf]  ;;  %v847_v33 = vor.u32 %v1037_v26, %v844_v27 }
  0x1c   :  { %v852_v32 = vld [vmem:[#allocation5 + $0xb8] sm:$0xf0]  ;;  %304 = vmatpush.bf16.msra.mxu1 %v863_v17  ;;  %v851_v34 = vor.u32 %v1040_v30, %v850_v28  ;;  %v826_v35 = vld [vmem:[#allocation5 + $0x80] sm:$0xf]  ;;  %v1035_v36 = vld [vmem:[#allocation5 + $0x8c] sm:$0xf0] }
  0x1d   :  { %318 = vmatpush.bf16.msra.mxu2 %v867_v21  ;;  %v1033_v37 = vld [vmem:[#allocation5 + $0x84] sm:$0xf]  ;;  %332 = vmatpush.bf16.msra.mxu3 %v871_v25  ;;  %v855_v38 = vor.u32 %v1038_v31, %v852_v32  ;;  %v828_v39 = vld [vmem:[#allocation5 + $0x90] sm:$0xf0]  ;;  %v834_v40 = vld [vmem:[#allocation5 + $0x88] sm:$0xf]  ;;  %v827_v44 = vor.u32 %v1035_v36, %v826_v35 }
  0x1e   :  { %v1036_v41 = vld [vmem:[#allocation5 + $0x94] sm:$0xf0]  ;;  %v1034_v42 = vld [vmem:[#allocation5 + $0x8c] sm:$0xf]  ;;  %v836_v43 = vld [vmem:[#allocation5 + $0x98] sm:$0xf0]  ;;  %v831_v45 = vor.u32 %v1033_v37, %v828_v39 }
  0x1f   :  { %291 = vmatpush.bf16.msra.mxu0 %v843_v29  ;;  %v835_v46 = vor.u32 %v1036_v41, %v834_v40  ;;  %v810_v47 = vld [vmem:[#allocation5 + $0x60] sm:$0xf]  ;;  %v1031_v48 = vld [vmem:[#allocation5 + $0x6c] sm:$0xf0]  ;;  %v1029_v49 = vld [vmem:[#allocation5 + $0x64] sm:$0xf]  ;;  %v839_v50 = vor.u32 %v1034_v42, %v836_v43 }
  0x20   :  { %305 = vmatpush.bf16.msra.mxu1 %v847_v33  ;;  %v812_v51 = vld [vmem:[#allocation5 + $0x70] sm:$0xf0]  ;;  %v818_v52 = vld [vmem:[#allocation5 + $0x68] sm:$0xf]  ;;  %v1032_v53 = vld [vmem:[#allocation5 + $0x74] sm:$0xf0]  ;;  %v811_v56 = vor.u32 %v1031_v48, %v810_v47 }
  0x21   :  { %319 = vmatpush.bf16.msra.mxu2 %v851_v34  ;;  %333 = vmatpush.bf16.msra.mxu3 %v855_v38  ;;  %v1030_v54 = vld [vmem:[#allocation5 + $0x6c] sm:$0xf]  ;;  %v820_v55 = vld [vmem:[#allocation5 + $0x78] sm:$0xf0]  ;;  %v815_v57 = vor.u32 %v1029_v49, %v812_v51  ;;  %v819_v58 = vor.u32 %v1032_v53, %v818_v52  ;;  %v794_v59 = vld [vmem:[#allocation5 + $0x40] sm:$0xf] }
  0x22   :  { %v1027_v60 = vld [vmem:[#allocation5 + $0x4c] sm:$0xf0]  ;;  %v1025_v61 = vld [vmem:[#allocation5 + $0x44] sm:$0xf]  ;;  %v823_v62 = vor.u32 %v1030_v54, %v820_v55  ;;  %v796_v63 = vld [vmem:[#allocation5 + $0x50] sm:$0xf0] }
  0x23   :  { %292 = vmatpush.bf16.msra.mxu0 %v827_v44  ;;  %v802_v0 = vld [vmem:[#allocation5 + $0x48] sm:$0xf]  ;;  %v1028_v1 = vld [vmem:[#allocation5 + $0x54] sm:$0xf0]  ;;  %v1026_v2 = vld [vmem:[#allocation5 + $0x4c] sm:$0xf]  ;;  %v795_v4 = vor.u32 %v1027_v60, %v794_v59  ;;  %v799_v5 = vor.u32 %v1025_v61, %v796_v63 }
  0x24   :  { %306 = vmatpush.bf16.msra.mxu1 %v831_v45  ;;  %v804_v3 = vld [vmem:[#allocation5 + $0x58] sm:$0xf0]  ;;  %v803_v6 = vor.u32 %v1028_v1, %v802_v0  ;;  %v778_v7 = vld [vmem:[#allocation5 + $0x20] sm:$0xf]  ;;  %v1023_v8 = vld [vmem:[#allocation5 + $0x2c] sm:$0xf0] }
  0x25   :  { %320 = vmatpush.bf16.msra.mxu2 %v835_v46  ;;  %334 = vmatpush.bf16.msra.mxu3 %v839_v50  ;;  %v1021_v9 = vld [vmem:[#allocation5 + $0x24] sm:$0xf]  ;;  %v807_v10 = vor.u32 %v1026_v2, %v804_v3  ;;  %v780_v11 = vld [vmem:[#allocation5 + $0x30] sm:$0xf0]  ;;  %v786_v12 = vld [vmem:[#allocation5 + $0x28] sm:$0xf]  ;;  %v779_v16 = vor.u32 %v1023_v8, %v778_v7 }
  0x26   :  { %v1024_v13 = vld [vmem:[#allocation5 + $0x34] sm:$0xf0]  ;;  %v1022_v14 = vld [vmem:[#allocation5 + $0x2c] sm:$0xf]  ;;  %v788_v15 = vld [vmem:[#allocation5 + $0x38] sm:$0xf0]  ;;  %v783_v17 = vor.u32 %v1021_v9, %v780_v11 }
  0x27   :  { %293 = vmatpush.bf16.msra.mxu0 %v811_v56  ;;  %v787_v18 = vor.u32 %v1024_v13, %v786_v12  ;;  %v762_v19 = vld [vmem:[#allocation5] sm:$0xf]  ;;  %v1019_v20 = vld [vmem:[#allocation5 + $0xc] sm:$0xf0]  ;;  %v1017_v21 = vld [vmem:[#allocation5 + $0x4] sm:$0xf]  ;;  %v791_v22 = vor.u32 %v1022_v14, %v788_v15 }
  0x28   :  { %307 = vmatpush.bf16.msra.mxu1 %v815_v57  ;;  %v764_v23 = vld [vmem:[#allocation5 + $0x10] sm:$0xf0]  ;;  %v770_v24 = vld [vmem:[#allocation5 + $0x8] sm:$0xf]  ;;  %v1020_v25 = vld [vmem:[#allocation5 + $0x14] sm:$0xf0]  ;;  %v763_v28 = vor.u32 %v1019_v20, %v762_v19 }
  0x29   :  { %321 = vmatpush.bf16.msra.mxu2 %v819_v58  ;;  %335 = vmatpush.bf16.msra.mxu3 %v823_v62  ;;  %v1018_v26 = vld [vmem:[#allocation5 + $0xc] sm:$0xf]  ;;  %v772_v27 = vld [vmem:[#allocation5 + $0x18] sm:$0xf0]  ;;  %v767_v29 = vor.u32 %v1017_v21, %v764_v23  ;;  %v771_v30 = vor.u32 %v1020_v25, %v770_v24  ;;  %v1055_v35 = vld [vmem:[#allocation8 + $0x30] sm:$0xff]  ;;  %s1244_s2 = smov [#allocation10]  }
  0x2a   :  { %v775_v31 = vor.u32 %v1018_v26, %v772_v27  ;;  %v1016_v32 = vld [vmem:[#allocation2] sm:$0xff]  ;;  %v1054_v39 = vld [vmem:[#allocation8 + $0x28] sm:$0xff]  ;;  %v1053_v43 = vld [vmem:[#allocation8 + $0x20] sm:$0xff]  ;;  %s739_s3 = sshll.u32 %s1244_s2, 4  ;;  %s741_s13 = sshll.u32 %s1321_s4, 4  ;;  %s740_s3 = int_to_ptr.vmem [resolvable:$true] %s739_s3  ;;  %s742_s13 = int_to_ptr.hbm [resolvable:$true] %s741_s13 }
  0x2b   :  { %294 = vmatpush.bf16.msra.mxu0 %v795_v4  ;;  %v1056_v33 = vld [vmem:[#allocation8 + $0x38] sm:$0xff]  ;;  %v1063_v36 = vld [vmem:[#allocation8 + $0x70] sm:$0xff]  ;;  %v1062_v40 = vld [vmem:[#allocation8 + $0x68] sm:$0xff]  ;;  %s1245_s14 = smov 128   ;;  %s1246_s15 = smov 8  }
  0x2c   :  { %308 = vmatpush.bf16.msra.mxu1 %v799_v5  ;;  %v1064_v34 = vld [vmem:[#allocation8 + $0x78] sm:$0xff]  ;;  %v1071_v41 = vld [vmem:[#allocation8 + $0xb0] sm:$0xff]  ;;  %v1061_v44 = vld [vmem:[#allocation8 + $0x60] sm:$0xff] }
  0x2d   :  { %322 = vmatpush.bf16.msra.mxu2 %v803_v6  ;;  %336 = vmatpush.bf16.msra.mxu3 %v807_v10  ;;  %v1072_v37 = vld [vmem:[#allocation8 + $0xb8] sm:$0xff]  ;;  %v1079_v42 = vld [vmem:[#allocation8 + $0xf0] sm:$0xff]  ;;  %v1070_v45 = vld [vmem:[#allocation8 + $0xa8] sm:$0xff] }
  0x2e   :  { %v1080_v38 = vld [vmem:[#allocation8 + $0xf8] sm:$0xff]  ;;  %v1078_v46 = vld [vmem:[#allocation8 + $0xe8] sm:$0xff]  ;;  %v1069_v49 = vld [vmem:[#allocation8 + $0xa0] sm:$0xff] }
  0x2f   :  { %295 = vmatpush.bf16.msra.mxu0 %v779_v16  ;;  %v1052_v47 = vld [vmem:[#allocation8 + $0x18] sm:$0xff]  ;;  %v1077_v50 = vld [vmem:[#allocation8 + $0xe0] sm:$0xff]  ;;  %v1051_v51 = vld [vmem:[#allocation8 + $0x10] sm:$0xff] }
  0x30   :  { %309 = vmatpush.bf16.msra.mxu1 %v783_v17  ;;  %v1060_v48 = vld [vmem:[#allocation8 + $0x58] sm:$0xff]  ;;  %v1059_v52 = vld [vmem:[#allocation8 + $0x50] sm:$0xff]  ;;  %v1050_v55 = vld [vmem:[#allocation8 + $0x8] sm:$0xff] }
  0x31   :  { %323 = vmatpush.bf16.msra.mxu2 %v787_v18  ;;  %337 = vmatpush.bf16.msra.mxu3 %v791_v22  ;;  %v1068_v53 = vld [vmem:[#allocation8 + $0x98] sm:$0xff]  ;;  %v1058_v56 = vld [vmem:[#allocation8 + $0x48] sm:$0xff]  ;;  %v1067_v57 = vld [vmem:[#allocation8 + $0x90] sm:$0xff] }
  0x32   :  { %v1076_v54 = vld [vmem:[#allocation8 + $0xd8] sm:$0xff]  ;;  %v1075_v58 = vld [vmem:[#allocation8 + $0xd0] sm:$0xff]  ;;  %v1049_v60 = vld [vmem:[#allocation8] sm:$0xff] }
  0x33   :  { %296 = vmatpush.bf16.msra.mxu0 %v763_v28  ;;  %v1284_v59 = vld [vmem:[#allocation7] sm:$0xf]  ;;  %v1057_v61 = vld [vmem:[#allocation8 + $0x40] sm:$0xff]  ;;  %v1066_v63 = vld [vmem:[#allocation8 + $0x88] sm:$0xff] }
  0x34   :  { %310 = vmatpush.bf16.msra.mxu1 %v767_v29  ;;  %v115_v62 = vperm.slane %v1284_v59, 0  ;;  %v1074_v0 = vld [vmem:[#allocation8 + $0xc8] sm:$0xff]  ;;  %v116_v1 = vperm.slane %v1284_v59, 1  ;;  %v1065_v6 = vld [vmem:[#allocation8 + $0x80] sm:$0xff]  ;;  %v117_v10 = vperm.slane %v1284_v59, 2  ;;  %v118_v12 = vperm.slane %v1284_v59, 3 }
  0x35   :  { %324 = vmatpush.bf16.msra.mxu2 %v771_v30  ;;  %338 = vmatpush.bf16.msra.mxu3 %v775_v31  ;;  %v1073_v7 = vld [vmem:[#allocation8 + $0xc0] sm:$0xff] }
  0x36   :  { %297 = vmatmul.bf16.vlgmr.msra.gmra.mxu0 %v1016_v32 }
  0x37   :  { %311 = vmatmul.bf16.vlgmr.msra.gmra.mxu1 %v1016_v32  ;;  %677 = vmatpush.bf16.msrb.mxu0 %v1056_v33 }
  0x38   :  { %325 = vmatmul.bf16.vlgmr.msra.gmra.mxu2 %v1016_v32  ;;  %339 = vmatmul.bf16.vlgmr.msra.gmra.mxu3 %v1016_v32 }
  0x39   :  { %691 = vmatpush.bf16.msrb.mxu1 %v1064_v34  ;;  %705 = vmatpush.bf16.msrb.mxu2 %v1072_v37 }
  0x3a   :  { %719 = vmatpush.bf16.msrb.mxu3 %v1080_v38 }
  0x3b   :  { %678 = vmatpush.bf16.msrb.mxu0 %v1055_v35 }
  0x3d   :  { %692 = vmatpush.bf16.msrb.mxu1 %v1063_v36  ;;  %706 = vmatpush.bf16.msrb.mxu2 %v1071_v41 }
  0x3e   :  { %720 = vmatpush.bf16.msrb.mxu3 %v1079_v42 }
  0x3f   :  { %679 = vmatpush.bf16.msrb.mxu0 %v1054_v39 }
  0x41   :  { %693 = vmatpush.bf16.msrb.mxu1 %v1062_v40  ;;  %707 = vmatpush.bf16.msrb.mxu2 %v1070_v45 }
  0x42   :  { %721 = vmatpush.bf16.msrb.mxu3 %v1078_v46 }
  0x43   :  { %680 = vmatpush.bf16.msrb.mxu0 %v1053_v43 }
  0x45   :  { %694 = vmatpush.bf16.msrb.mxu1 %v1061_v44  ;;  %708 = vmatpush.bf16.msrb.mxu2 %v1069_v49 }
  0x46   :  { %722 = vmatpush.bf16.msrb.mxu3 %v1077_v50 }
  0x47   :  { %681 = vmatpush.bf16.msrb.mxu0 %v1052_v47 }
  0x49   :  { %695 = vmatpush.bf16.msrb.mxu1 %v1060_v48  ;;  %709 = vmatpush.bf16.msrb.mxu2 %v1068_v53 }
  0x4a   :  { %723 = vmatpush.bf16.msrb.mxu3 %v1076_v54 }
  0x4b   :  { %682 = vmatpush.bf16.msrb.mxu0 %v1051_v51 }
  0x4d   :  { %696 = vmatpush.bf16.msrb.mxu1 %v1059_v52  ;;  %710 = vmatpush.bf16.msrb.mxu2 %v1067_v57 }
  0x4e   :  { %724 = vmatpush.bf16.msrb.mxu3 %v1075_v58 }
  0x4f   :  { %683 = vmatpush.bf16.msrb.mxu0 %v1050_v55 }
  0x51   :  { %697 = vmatpush.bf16.msrb.mxu1 %v1058_v56  ;;  %711 = vmatpush.bf16.msrb.mxu2 %v1066_v63 }
  0x52   :  { %725 = vmatpush.bf16.msrb.mxu3 %v1074_v0 }
  0x53   :  { %684 = vmatpush.bf16.msrb.mxu0 %v1049_v60 }
  0x55   :  { %698 = vmatpush.bf16.msrb.mxu1 %v1057_v61  ;;  %712 = vmatpush.bf16.msrb.mxu2 %v1065_v6 }
  0x56   :  { %726 = vmatpush.bf16.msrb.mxu3 %v1073_v7 }
  0xb3   :  { %v298_v2 = vpop.f32.mrf.mxu0 }
  0xb4   :  { %v1288_v3 = vadd.f32 %v298_v2, %v115_v62  ;;  %v312_v4 = vpop.f32.mrf.mxu1 }
  0xb5   :  { %v1290_v5 = vadd.f32 %v312_v4, %v116_v1 }
  0xb6   :  { %v361_v8 = vmul.f32 0.044715, %v1288_v3  ;;  %v353_v15 = vmul.f32 0.7978846, %v1288_v3  ;;  %v345_v6 = vmul.f32 0.5, %v1288_v3 }
  0xb7   :  { %v362_v9 = vmul.f32 0.044715, %v1290_v5  ;;  %v354_v20 = vmul.f32 0.7978846, %v1290_v5 }
  0xb8   :  { %v369_v11 = vmul.f32 %v361_v8, %v1288_v3 }
  0xb9   :  { %v370_v13 = vmul.f32 %v362_v9, %v1290_v5 }
  0xba   :  { %v377_v16 = vadd.f32 1.0, %v369_v11 }
  0xbb   :  { %v326_v14 = vpop.f32.mrf.mxu2  ;;  %v340_v18 = vpop.f32.mrf.mxu3  ;;  %v378_v21 = vadd.f32 1.0, %v370_v13 }
  0xbc   :  { %v1299_v17 = vadd.f32 %v326_v14, %v117_v10  ;;  %v300_v19 = vpop.f32.mrf.mxu0  ;;  %v1302_v22 = vadd.f32 %v340_v18, %v118_v12  ;;  %v314_v24 = vpop.f32.mrf.mxu1  ;;  %v385_v31 = vmul.f32 %v377_v16, %v353_v15 }
  0xbd   :  { %v301_v23 = vadd.f32 %v300_v19, %v115_v62  ;;  %v315_v26 = vadd.f32 %v314_v24, %v116_v1  ;;  %v386_v33 = vmul.f32 %v378_v21, %v354_v20 }
  0xbe   :  { %v363_v25 = vmul.f32 0.044715, %v1299_v17  ;;  %v364_v27 = vmul.f32 0.044715, %v1302_v22  ;;  %v355_v37 = vmul.f32 0.7978846, %v1299_v17  ;;  %1092 = vtanh.f32 %v385_v31 }
  0xbf   :  { %v365_v29 = vmul.f32 0.044715, %v301_v23  ;;  %v366_v30 = vmul.f32 0.044715, %v315_v26  ;;  %v357_v39 = vmul.f32 0.7978846, %v301_v23  ;;  %1094 = vtanh.f32 %v386_v33 }
  0xc0   :  { %v371_v28 = vmul.f32 %v363_v25, %v1299_v17  ;;  %v372_v32 = vmul.f32 %v364_v27, %v1302_v22  ;;  %v356_v45 = vmul.f32 0.7978846, %v1302_v22  ;;  %v358_v46 = vmul.f32 0.7978846, %v315_v26 }
  0xc1   :  { %v373_v35 = vmul.f32 %v365_v29, %v301_v23  ;;  %v374_v36 = vmul.f32 %v366_v30, %v315_v26  ;;  %v349_v7 = vmul.f32 0.5, %v301_v23  ;;  %v350_v11 = vmul.f32 0.5, %v315_v26 }
  0xc2   :  { %v379_v34 = vadd.f32 1.0, %v371_v28  ;;  %v380_v38 = vadd.f32 1.0, %v372_v32  ;;  %v347_v3 = vmul.f32 0.5, %v1299_v17 }
  0xc3   :  { %v328_v40 = vpop.f32.mrf.mxu2  ;;  %v381_v41 = vadd.f32 1.0, %v373_v35  ;;  %v382_v42 = vadd.f32 1.0, %v374_v36  ;;  %v342_v44 = vpop.f32.mrf.mxu3 }
  0xc4   :  { %v329_v43 = vadd.f32 %v328_v40, %v117_v10  ;;  %v343_v47 = vadd.f32 %v342_v44, %v118_v12  ;;  %v387_v50 = vmul.f32 %v379_v34, %v355_v37  ;;  %v388_v53 = vmul.f32 %v380_v38, %v356_v45  ;;  %v1093_v56 = vpop.eup %1092 }
  0xc5   :  { %v389_v49 = vmul.f32 %v381_v41, %v357_v39  ;;  %v390_v52 = vmul.f32 %v382_v42, %v358_v46  ;;  %v1095_v59 = vpop.eup %1094  ;;  %v401_v63 = vadd.f32 1.0, %v1093_v56  ;;  %v346_v10 = vmul.f32 0.5, %v1290_v5 }
  0xc6   :  { %v367_v48 = vmul.f32 0.044715, %v329_v43  ;;  %v368_v51 = vmul.f32 0.044715, %v343_v47  ;;  %v359_v57 = vmul.f32 0.7978846, %v329_v43 }
  0xc7   :  { %1096 = vtanh.f32 %v389_v49  ;;  %v360_v60 = vmul.f32 0.7978846, %v343_v47  ;;  %v402_v2 = vadd.f32 1.0, %v1095_v59  ;;  %v409_v14 = vmul.f32 %v401_v63, %v345_v6 }
  0xc8   :  { %v375_v54 = vmul.f32 %v367_v48, %v329_v43  ;;  %v376_v55 = vmul.f32 %v368_v51, %v343_v47  ;;  %1098 = vtanh.f32 %v390_v52  ;;  %v351_v23 = vmul.f32 0.5, %v329_v43 }
  0xc9   :  { %1100 = vtanh.f32 %v387_v50  ;;  %v410_v16 = vmul.f32 %v402_v2, %v346_v10  ;;  %v348_v5 = vmul.f32 0.5, %v1302_v22  ;;  %v352_v26 = vmul.f32 0.5, %v343_v47 }
  0xca   :  { %v383_v58 = vadd.f32 1.0, %v375_v54  ;;  %v384_v61 = vadd.f32 1.0, %v376_v55  ;;  %1102 = vtanh.f32 %v388_v53 }
  0xcc   :  { %v391_v62 = vmul.f32 %v383_v58, %v359_v57  ;;  %v392_v0 = vmul.f32 %v384_v61, %v360_v60 }
  0xcd   :  { %v1097_v1 = vpop.eup %1096 }
  0xce   :  { %1104 = vtanh.f32 %v391_v62  ;;  %v1099_v4 = vpop.eup %1098  ;;  %v405_v8 = vadd.f32 1.0, %v1097_v1 }
  0xcf   :  { %1106 = vtanh.f32 %v392_v0  ;;  %v1101_v9 = vpop.eup %1100  ;;  %v406_v12 = vadd.f32 1.0, %v1099_v4 }
  0xd0   :  { %v1103_v13 = vpop.eup %1102  ;;  %v413_v15 = vmul.f32 %v405_v8, %v349_v7  ;;  %v403_v20 = vadd.f32 1.0, %v1101_v9 }
  0xd1   :  { %v414_v18 = vmul.f32 %v406_v12, %v350_v11  ;;  %v404_v25 = vadd.f32 1.0, %v1103_v13 }
  0xd2   :  { %v417_v19 = vpack.c.bf16 %v413_v15, %v409_v14  ;;  %v411_v30 = vmul.f32 %v403_v20, %v347_v3 }
  0xd3   :  { %v418_v24 = vpack.c.bf16 %v414_v18, %v410_v16  ;;  %v412_v32 = vmul.f32 %v404_v25, %v348_v5 }
  0xd4   :  { %v1105_v21 = vpop.eup %1104  ;;  %685 = vmatmul.bf16.vlgmr.msrb.gmra.mxu0 %v417_v19 }
  0xd5   :  { %v1107_v27 = vpop.eup %1106  ;;  %v407_v28 = vadd.f32 1.0, %v1105_v21  ;;  %699 = vmatmul.bf16.vlgmr.msrb.gmra.mxu1 %v418_v24 }
  0xd6   :  { %v408_v29 = vadd.f32 1.0, %v1107_v27 }
  0xd7   :  { %v415_v31 = vmul.f32 %v407_v28, %v351_v23 }
  0xd8   :  { %v416_v33 = vmul.f32 %v408_v29, %v352_v26 }
  0xd9   :  { %v419_v34 = vpack.c.bf16 %v415_v31, %v411_v30 }
  0xda   :  { %v420_v35 = vpack.c.bf16 %v416_v33, %v412_v32 }
  0xdb   :  { %713 = vmatmul.bf16.vlgmr.msrb.gmra.mxu2 %v419_v34 }
  0xdc   :  { %727 = vmatmul.bf16.vlgmr.msrb.gmra.mxu3 %v420_v35 }
 0x151   :  { %v686_v36 = vpop.f32.mrf.mxu0 }
 0x152   :  { %v700_v37 = vpop.f32.mrf.mxu1 }
 0x153   :  { %v701_v38 = vadd.f32 %v700_v37, %v686_v36 }
 0x159   :  { %v688_v42 = vpop.f32.mrf.mxu0 }
 0x15a   :  { %v702_v43 = vpop.f32.mrf.mxu1 }
 0x15b   :  { %v703_v22 = vadd.f32 %v702_v43, %v688_v42 }
 0x15e   :  { %v714_v39 = vpop.f32.mrf.mxu2 }
 0x15f   :  { %v715_v17 = vadd.f32 %v714_v39, %v701_v38  ;;  %v728_v40 = vpop.f32.mrf.mxu3 }
 0x161   :  { %v729_v41 = vadd.f32 %v728_v40, %v715_v17 }
 0x163   :  { %733 = vst [vmem:[#allocation10] sm:$0xff] %v729_v41 }
 0x166   :  { %v716_v44 = vpop.f32.mrf.mxu2 }
 0x167   :  { %v717_v45 = vadd.f32 %v716_v44, %v703_v22  ;;  %v730_v46 = vpop.f32.mrf.mxu3 }
 0x169   :  { %v731_v47 = vadd.f32 %v730_v46, %v717_v45 }
 0x16b   :  { %734 = vst [vmem:[#allocation10 + $0x8] sm:$0xff] %v731_v47 }
 0x16c   :  { %747 = dma.vmem_to_hbm [thread:$0]  %s740_s3, 256, %s742_s13, [#allocation4], %s1245_s14, %s1245_s14, %s1246_s15  }
 0x16d   :  { %1234 = dma.done.wait [#allocation4], 256  }
 0x16e   :  { %1235 = vsyncadd [#allocation4], 4294967040 }
 0x16f   :  { %752 = vsyncpa [#allocation3], 1 }
 0x170   :  { %753 = vsyncpa [#allocation6], 1 }
 0x171   :  { %754 = vsyncpa [#allocation9], 1 }
 0x172   :  { %755 = vsyncpa [#allocation4], 1 }

</bundles_post_ra>
